<compile_context>
chip_gen: v5e
topology: v5e:2x2
jax: 0.10.0
libtpu: 0.0.40
codegen_flags: <defaults>
</compile_context>

<pallas_src>
import math
from functools import partial

import jax
import jax.numpy as jnp
from jax import lax
from jax.experimental import pallas as pl
from jax.experimental.pallas import tpu as pltpu


def _edge_loss_kernel(x_ref, y_ref, out_ref, acc_ref, *, plane_h, plane_w):
    """x_ref, y_ref: (B_TILE*H, P*W) slab — B_TILE groups of P planes packed
    side-by-side along the lane axis.  out_ref: (1,1) total SSE (written once
    on the last grid step).  acc_ref: (1,1) f32 VMEM accumulator, resident
    across the whole grid."""
    b = pl.program_id(0)

    @pl.when(b == 0)
    def _init():
        acc_ref[...] = jnp.zeros_like(acc_ref)

    # Conv linearity: lap(x) - lap(y) == lap(x - y) -> filter the difference once.
    d = x_ref[...].astype(jnp.float32) - y_ref[...].astype(jnp.float32)
    R, L = d.shape  # static block dims

    # Border masks from 1-D iotas (mod plane size so the circular rolls never
    # leak across packed-plane boundaries), applied as 0/1 f32 multiplies.
    col = lax.broadcasted_iota(jnp.int32, (1, L), 1) % plane_w      # (1, L)
    lm = (col > 0).astype(jnp.float32)
    rm = (col < plane_w - 1).astype(jnp.float32)
    row = lax.broadcasted_iota(jnp.int32, (R, 1), 0) % plane_h      # (R, 1)
    um = (row > 0).astype(jnp.float32)
    dm = (row < plane_h - 1).astype(jnp.float32)

    # Separable 3x3 box sum with implicit zero padding (conv2d padding=1).
    # pltpu.roll requires non-negative shifts: circular shift by (size-1) == -1.
    r = (lm * pltpu.roll(d, shift=1, axis=1)
         + d
         + rm * pltpu.roll(d, shift=L - 1, axis=1))          # lane (W) pass
    s = (um * pltpu.roll(r, shift=1, axis=0)
         + r
         + dm * pltpu.roll(r, shift=R - 1, axis=0))          # sublane (H) pass

    # Cross-correlation with [[-1,-1,-1],[-1,8,-1],[-1,-1,-1]]:
    #   lap(d) = 9*d_center - boxsum3x3(d)
    lap = 9.0 * d - s
    acc_ref[...] += jnp.sum(lap * lap)

    @pl.when(b == pl.num_programs(0) - 1)
    def _finish():
        out_ref[...] = acc_ref[...]


def edge_conv_loss(inp: jax.Array, tgt: jax.Array,
                   block_bytes_target: int = 1 << 20) -> jax.Array:
    """inp, tgt: (N, 1, H, W) NCHW, single channel. Returns scalar MSE of edge maps."""
    assert inp.shape == tgt.shape
    N, C, H, W = inp.shape
    assert C == 1, "EdgeConvloss kernel is (1,1,3,3): single input channel"

    # ---- Lane packing: put P planes side by side along the lane axis so the
    # kernel's last dim is as close to a multiple of 128 as the batch allows.
    p_full = 128 // math.gcd(W, 128)        # smallest P with (P*W) % 128 == 0
    P = math.gcd(N, p_full)                 # must divide N (no zero-pad DMA)
    G = N // P                              # number of packed groups
    L = P * W                               # lane extent of one group

    # (N,1,H,W) -> (G,P,H,W) -> (G,H,P,W) -> (G*H, P*W): layout plumbing only;
    # native dtype is kept (upcast happens in-kernel).
    def pack(a):
        return a.reshape(G, P, H, W).transpose(0, 2, 1, 3).reshape(G * H, L)

    x = pack(inp)
    y = pack(tgt)

    # ---- Batch several groups per grid step so each step DMAs a decent chunk
    # (amortizes per-grid-step overhead and keeps the DMA pipeline busy).
    bytes_per_group = H * L * x.dtype.itemsize
    b_tile = 1
    for dv in range(1, G + 1):
        if G % dv == 0 and dv * bytes_per_group <= block_bytes_target:
            b_tile = dv
    # (8,128) rule on the sublane block dim: need (b_tile*H) % 8 == 0 unless the
    # block spans the full row extent.
    if b_tile < G and (b_tile * H) % 8 != 0:
        b_tile = G
    grid = (G // b_tile,)
    rows = b_tile * H

    kernel = partial(_edge_loss_kernel, plane_h=H, plane_w=W)

    # TODO(synk): for very large planes also tile H with a 1-row halo (halo rows
    # used only as neighbors, excluded from the SSE), and use pltpu.CORE_PARALLEL
    # / core_map with per-core partial outputs for 2-TensorCore splits on v7x.
    sse = pl.pallas_call(
        kernel,
        out_shape=jax.ShapeDtypeStruct((1, 1), jnp.float32),
        grid=grid,
        in_specs=[
            pl.BlockSpec((rows, L), lambda b: (b, 0)),
            pl.BlockSpec((rows, L), lambda b: (b, 0)),
        ],
        out_specs=pl.BlockSpec((1, 1), lambda b: (0, 0)),
        scratch_shapes=[pltpu.VMEM((1, 1), jnp.float32)],
        compiler_params=pltpu.CompilerParams(
            # Grid axis carries the resident scalar accumulator -> "arbitrary".
            dimension_semantics=("arbitrary",),
            vmem_limit_bytes=32 * 1024 * 1024,
        ),
    )(x, y)

    # mse_loss: mean over all N*C*H*W elements of the edge maps.
    return sse[0, 0] / jnp.float32(N * C * H * W)


def _reference_loss(inp, tgt):
    """Pure-JAX reference using lax conv, mirroring F.conv2d + F.mse_loss."""
    k = jnp.array([[-1.0, -1.0, -1.0], [-1.0, 8.0, -1.0], [-1.0, -1.0, -1.0]],
                  dtype=jnp.float32).reshape(1, 1, 3, 3)
    dn = lax.conv_dimension_numbers(inp.shape, k.shape, ("NCHW", "OIHW", "NCHW"))
    e1 = lax.conv_general_dilated(inp.astype(jnp.float32), k, (1, 1), ((1, 1), (1, 1)),
                                  dimension_numbers=dn)
    e2 = lax.conv_general_dilated(tgt.astype(jnp.float32), k, (1, 1), ((1, 1), (1, 1)),
                                  dimension_numbers=dn)
    return jnp.mean((e1 - e2) ** 2)


if __name__ == "__main__":
    key = jax.random.PRNGKey(0)

    # Primary check: shapes consistent with the module (C=1 fixed by the
    # (1,1,3,3) kernel), N=2, 16x16 spatial.
    k1, k2 = jax.random.split(key)
    inp = jax.random.normal(k1, (2, 1, 16, 16), dtype=jnp.float32)
    tgt = jax.random.normal(k2, (2, 1, 16, 16), dtype=jnp.float32)
    loss = jax.block_until_ready(edge_conv_loss(inp, tgt))
    ref = jax.block_until_ready(_reference_loss(inp, tgt))
    assert jnp.allclose(loss, ref, rtol=1e-3, atol=1e-3), (loss, ref)

    # Secondary check: exercises lane packing (P=8 -> 128 lanes) and a
    # multi-step grid with the resident accumulator (tiny block target forces
    # more than one grid step).
    k3, k4 = jax.random.split(k2)
    inp2 = jax.random.normal(k3, (16, 1, 16, 16), dtype=jnp.float32)
    tgt2 = jax.random.normal(k4, (16, 1, 16, 16), dtype=jnp.float32)
    loss2 = jax.block_until_ready(edge_conv_loss(inp2, tgt2, block_bytes_target=4096))
    ref2 = jax.block_until_ready(_reference_loss(inp2, tgt2))
    assert jnp.allclose(loss2, ref2, rtol=1e-3, atol=1e-3), (loss2, ref2)

    print("KERNEL_OK")
</pallas_src>

<mosaic_0001>
module attributes {stable_mosaic.version = 11 : i64} {
  func.func @_edge_loss_kernel(%arg0: i32, %arg1: memref<16x32xf32, #tpu.memory_space<vmem>>, %arg2: memref<16x32xf32, #tpu.memory_space<vmem>>, %arg3: memref<1x1xf32, #tpu.memory_space<vmem>>, %arg4: memref<1x1xf32, #tpu.memory_space<vmem>>) attributes {dimension_semantics = [#tpu.dimension_semantics<arbitrary>], iteration_bounds = array<i64: 1>, scalar_prefetch = 0 : i64, scratch_operands = 1 : i64, tpu.core_type = #tpu.core_type<tc>, window_params = [{transform_indices = @transform_0, window_bounds = array<i64: 16, 32>}, {transform_indices = @transform_1, window_bounds = array<i64: 16, 32>}, {pipeline_mode = #tpu.pipeline_mode<synchronous>, transform_indices = @transform_2, window_bounds = array<i64: 1, 1>}]} {
    %c0_i32 = arith.constant 0 : i32
    %0 = arith.cmpi eq, %arg0, %c0_i32 : i32
    %1 = arith.extui %0 : i1 to i32
    %c0_i32_0 = arith.constant 0 : i32
    %2 = arith.cmpi ne, %1, %c0_i32_0 : i32
    scf.if %2 {
      %cst_27 = arith.constant 0.000000e+00 : f32
      %87 = vector.broadcast %cst_27 : f32 to vector<1x1xf32>
      %c0_28 = arith.constant 0 : index
      %c0_29 = arith.constant 0 : index
      %88 = vector.load %arg4[%c0_28, %c0_29] : memref<1x1xf32, #tpu.memory_space<vmem>>, vector<1x1xf32>
      tpu.vector_store %arg4[%c0_28, %c0_29], %87 {strides = array<i32>} : memref<1x1xf32, #tpu.memory_space<vmem>>, vector<1x1xf32>,
    } else {
    }
    %c0 = arith.constant 0 : index
    %c0_1 = arith.constant 0 : index
    %3 = vector.load %arg1[%c0, %c0_1] : memref<16x32xf32, #tpu.memory_space<vmem>>, vector<16x32xf32>
    %c0_2 = arith.constant 0 : index
    %c0_3 = arith.constant 0 : index
    %4 = vector.load %arg2[%c0_2, %c0_3] : memref<16x32xf32, #tpu.memory_space<vmem>>, vector<16x32xf32>
    %5 = arith.subf %3, %4 : vector<16x32xf32>
    %6 = tpu.iota {dimensions = array<i32: 1>} : vector<1x32xi32>
    %c16_i32 = arith.constant 16 : i32
    %c0_i32_4 = arith.constant 0 : i32
    %7 = arith.cmpi eq, %c16_i32, %c0_i32_4 : i32
    %c1_i32 = arith.constant 1 : i32
    %8 = arith.select %7, %c1_i32, %c16_i32 : i32
    %9 = vector.broadcast %8 : i32 to vector<1x32xi32>
    %10 = arith.remsi %6, %9 : vector<1x32xi32>
    %c0_i32_5 = arith.constant 0 : i32
    %11 = vector.broadcast %c0_i32_5 : i32 to vector<1x32xi32>
    %12 = arith.cmpi ne, %10, %11 : vector<1x32xi32>
    %c0_i32_6 = arith.constant 0 : i32
    %13 = vector.broadcast %c0_i32_6 : i32 to vector<1x32xi32>
    %14 = arith.cmpi slt, %10, %13 : vector<1x32xi32>
    %c0_i32_7 = arith.constant 0 : i32
    %15 = arith.cmpi slt, %8, %c0_i32_7 : i32
    %16 = vector.broadcast %15 : i1 to vector<1x32xi1>
    %17 = vector.broadcast %16 : vector<1x32xi1> to vector<1x32xi1>
    %18 = arith.xori %14, %17 : vector<1x32xi1>
    %19 = arith.andi %18, %12 : vector<1x32xi1>
    %20 = vector.broadcast %8 : i32 to vector<1x32xi32>
    %21 = arith.addi %10, %20 : vector<1x32xi32>
    %22 = arith.select %19, %21, %10 : vector<1x32xi1>, vector<1x32xi32>
    %c0_i32_8 = arith.constant 0 : i32
    %23 = vector.broadcast %c0_i32_8 : i32 to vector<1x32xi32>
    %24 = arith.cmpi sgt, %22, %23 : vector<1x32xi32>
    %25 = arith.extui %24 : vector<1x32xi1> to vector<1x32xi32>
    %26 = arith.sitofp %25 : vector<1x32xi32> to vector<1x32xf32>
    %c15_i32 = arith.constant 15 : i32
    %27 = vector.broadcast %c15_i32 : i32 to vector<1x32xi32>
    %28 = arith.cmpi slt, %22, %27 : vector<1x32xi32>
    %29 = arith.extui %28 : vector<1x32xi1> to vector<1x32xi32>
    %30 = arith.sitofp %29 : vector<1x32xi32> to vector<1x32xf32>
    %31 = tpu.iota {dimensions = array<i32: 0>} : vector<16x1xi32>
    %c16_i32_9 = arith.constant 16 : i32
    %c0_i32_10 = arith.constant 0 : i32
    %32 = arith.cmpi eq, %c16_i32_9, %c0_i32_10 : i32
    %c1_i32_11 = arith.constant 1 : i32
    %33 = arith.select %32, %c1_i32_11, %c16_i32_9 : i32
    %34 = vector.broadcast %33 : i32 to vector<16x1xi32>
    %35 = arith.remsi %31, %34 : vector<16x1xi32>
    %c0_i32_12 = arith.constant 0 : i32
    %36 = vector.broadcast %c0_i32_12 : i32 to vector<16x1xi32>
    %37 = arith.cmpi ne, %35, %36 : vector<16x1xi32>
    %c0_i32_13 = arith.constant 0 : i32
    %38 = vector.broadcast %c0_i32_13 : i32 to vector<16x1xi32>
    %39 = arith.cmpi slt, %35, %38 : vector<16x1xi32>
    %c0_i32_14 = arith.constant 0 : i32
    %40 = arith.cmpi slt, %33, %c0_i32_14 : i32
    %41 = vector.broadcast %40 : i1 to vector<16x1xi1>
    %42 = vector.broadcast %41 : vector<16x1xi1> to vector<16x1xi1>
    %43 = arith.xori %39, %42 : vector<16x1xi1>
    %44 = arith.andi %43, %37 : vector<16x1xi1>
    %45 = vector.broadcast %33 : i32 to vector<16x1xi32>
    %46 = arith.addi %35, %45 : vector<16x1xi32>
    %47 = arith.select %44, %46, %35 : vector<16x1xi1>, vector<16x1xi32>
    %c0_i32_15 = arith.constant 0 : i32
    %48 = vector.broadcast %c0_i32_15 : i32 to vector<16x1xi32>
    %49 = arith.cmpi sgt, %47, %48 : vector<16x1xi32>
    %50 = arith.extui %49 : vector<16x1xi1> to vector<16x1xi32>
    %51 = arith.sitofp %50 : vector<16x1xi32> to vector<16x1xf32>
    %c15_i32_16 = arith.constant 15 : i32
    %52 = vector.broadcast %c15_i32_16 : i32 to vector<16x1xi32>
    %53 = arith.cmpi slt, %47, %52 : vector<16x1xi32>
    %54 = arith.extui %53 : vector<16x1xi1> to vector<16x1xi32>
    %55 = arith.sitofp %54 : vector<16x1xi32> to vector<16x1xf32>
    %c1_i32_17 = arith.constant 1 : i32
    %56 = tpu.dynamic_rotate %5 by %c1_i32_17 dim 1 : vector<16x32xf32>, i32 -> vector<16x32xf32>
    %57 = vector.broadcast %26 : vector<1x32xf32> to vector<16x32xf32>
    %58 = arith.mulf %57, %56 : vector<16x32xf32>
    %59 = arith.addf %58, %5 : vector<16x32xf32>
    %c31_i32 = arith.constant 31 : i32
    %60 = tpu.dynamic_rotate %5 by %c31_i32 dim 1 : vector<16x32xf32>, i32 -> vector<16x32xf32>
    %61 = vector.broadcast %30 : vector<1x32xf32> to vector<16x32xf32>
    %62 = arith.mulf %61, %60 : vector<16x32xf32>
    %63 = arith.addf %59, %62 : vector<16x32xf32>
    %c1_i32_18 = arith.constant 1 : i32
    %64 = tpu.dynamic_rotate %63 by %c1_i32_18 dim 0 : vector<16x32xf32>, i32 -> vector<16x32xf32>
    %65 = vector.broadcast %51 : vector<16x1xf32> to vector<16x32xf32>
    %66 = arith.mulf %65, %64 : vector<16x32xf32>
    %67 = arith.addf %66, %63 : vector<16x32xf32>
    %c15_i32_19 = arith.constant 15 : i32
    %68 = tpu.dynamic_rotate %63 by %c15_i32_19 dim 0 : vector<16x32xf32>, i32 -> vector<16x32xf32>
    %69 = vector.broadcast %55 : vector<16x1xf32> to vector<16x32xf32>
    %70 = arith.mulf %69, %68 : vector<16x32xf32>
    %71 = arith.addf %67, %70 : vector<16x32xf32>
    %cst = arith.constant 9.000000e+00 : f32
    %72 = vector.broadcast %cst : f32 to vector<16x32xf32>
    %73 = arith.mulf %72, %5 : vector<16x32xf32>
    %74 = arith.subf %73, %71 : vector<16x32xf32>
    %c0_20 = arith.constant 0 : index
    %c0_21 = arith.constant 0 : index
    %75 = vector.load %arg4[%c0_20, %c0_21] : memref<1x1xf32, #tpu.memory_space<vmem>>, vector<1x1xf32>
    %76 = arith.mulf %74, %74 : vector<16x32xf32>
    %77 = vector.shape_cast %76 : vector<16x32xf32> to vector<1x16x32xf32>
    %cst_22 = arith.constant dense<0.000000e+00> : vector<1xf32>
    %78 = vector.multi_reduction <add>, %77, %cst_22 [1, 2] : vector<1x16x32xf32> to vector<1xf32>
    %79 = vector.shape_cast %78 : vector<1xf32> to vector<1x1x1xf32>
    %80 = vector.extract %79[0, 0, 0] : f32 from vector<1x1x1xf32>
    %81 = vector.broadcast %80 : f32 to vector<1x1xf32>
    %82 = arith.addf %75, %81 : vector<1x1xf32>
    %c0_23 = arith.constant 0 : index
    %c0_24 = arith.constant 0 : index
    %83 = vector.load %arg4[%c0_23, %c0_24] : memref<1x1xf32, #tpu.memory_space<vmem>>, vector<1x1xf32>
    tpu.vector_store %arg4[%c0_23, %c0_24], %82 {strides = array<i32>} : memref<1x1xf32, #tpu.memory_space<vmem>>, vector<1x1xf32>,
    %c0_i32_25 = arith.constant 0 : i32
    %84 = arith.cmpi eq, %arg0, %c0_i32_25 : i32
    %85 = arith.extui %84 : i1 to i32
    %c0_i32_26 = arith.constant 0 : i32
    %86 = arith.cmpi ne, %85, %c0_i32_26 : i32
    scf.if %86 {
      %c0_27 = arith.constant 0 : index
      %c0_28 = arith.constant 0 : index
      %87 = vector.load %arg4[%c0_27, %c0_28] : memref<1x1xf32, #tpu.memory_space<vmem>>, vector<1x1xf32>
      %c0_29 = arith.constant 0 : index
      %c0_30 = arith.constant 0 : index
      %88 = vector.load %arg3[%c0_29, %c0_30] : memref<1x1xf32, #tpu.memory_space<vmem>>, vector<1x1xf32>
      tpu.vector_store %arg3[%c0_29, %c0_30], %87 {strides = array<i32>} : memref<1x1xf32, #tpu.memory_space<vmem>>, vector<1x1xf32>,
    } else {
    }
    return
  }
  func.func @transform_0(%arg0: i32) -> (i32, i32) {
    %c0_i32 = arith.constant 0 : i32
    %c0_i32_0 = arith.constant 0 : i32
    return %arg0, %c0_i32 : i32, i32
  }
  func.func @transform_1(%arg0: i32) -> (i32, i32) {
    %c0_i32 = arith.constant 0 : i32
    %c0_i32_0 = arith.constant 0 : i32
    return %arg0, %c0_i32 : i32, i32
  }
  func.func @transform_2(%arg0: i32) -> (i32, i32) {
    %c0_i32 = arith.constant 0 : i32
    %c0_i32_0 = arith.constant 0 : i32
    %c0_i32_1 = arith.constant 0 : i32
    return %c0_i32, %c0_i32_0 : i32, i32
  }
}

</mosaic_0001>

<bundles_post_ra>
// kernel: tpu_custom_call.1
= control target key start
LH: loop header
LB: loop body
LE: loop exit
PB: predicated region body
PF: predicated region fallthrough
CT: control target
= control target key end

     0   :  { %7 = vsyncpa [#allocation4], 0  ;;  %s351_s0 = inlined_call_operand.hbm [shape: f32[16,32], index: 0, kind: input, shape index: {}]   ;;  %s352_s1 = inlined_call_operand.hbm [shape: f32[16,32], index: 1, kind: input, shape index: {}]   ;;  %s353_s2 = inlined_call_operand.hbm [shape: f32[1,1], index: 2, kind: output, shape index: {}]  }
   0x1   :  { %8 = vsyncpa [#allocation7], 0 }
   0x2   :  { %9 = vsyncpa [#allocation5], 0  ;;  %s14_s11 = sshll.u32 %s351_s0, 4  ;;  %s308_s12 = smov [#allocation3]   ;;  %s15_s11 = int_to_ptr.hbm [resolvable:$true] %s14_s11 }
   0x3   :  { %s16_s13 = sshll.u32 %s308_s12, 4  ;;  %s27_s16 = sshll.u32 %s352_s1, 4  ;;  %s17_s13 = int_to_ptr.vmem [resolvable:$true] %s16_s13  ;;  %s28_s16 = int_to_ptr.hbm [resolvable:$true] %s27_s16 }
   0x4   :  { %s309_s17 = smov 128   ;;  %s310_s18 = smov 8  }
   0x5   :  { %22 = dma.hbm_to_vmem [thread:$0]  %s15_s11, 256, %s17_s13, [#allocation4], %s309_s17, %s309_s17, %s310_s18  }
   0x6   :  { %s311_s19 = smov [#allocation6]  }
   0x7   :  { %s29_s20 = sshll.u32 %s311_s19, 4  ;;  %s30_s20 = int_to_ptr.vmem [resolvable:$true] %s29_s20 }
   0x8   :  { %35 = dma.hbm_to_vmem [thread:$0]  %s28_s16, 256, %s30_s20, [#allocation7], %s309_s17, %s309_s17, %s310_s18  }
   0x9   :  { %302 = dma.done.wait [#allocation4], 256  }
   0xa   :  { %303 = vsyncadd [#allocation4], 4294967040 }
   0xb   :  { %304 = dma.done.wait [#allocation7], 256  }
   0xc   :  { %305 = vsyncadd [#allocation7], 4294967040  ;;  %v50_v0 = vld [vmem:[#allocation3] sm:$0xff]  ;;  %v52_v1 = vld [vmem:[#allocation6] sm:$0xff]  ;;  %s312_s0 = smov 32   ;;  %vm115_vm0 = vcmask 1047808   ;;  %v56_v14 = vlaneseq }
   0xd   :  { %v338_v2 = vsub.f32 %v50_v0, %v52_v1  ;;  %v51_v3 = vld [vmem:[#allocation3 + $0x8] sm:$0xff]  ;;  %v53_v4 = vld [vmem:[#allocation6 + $0x8] sm:$0xff]  ;;  %s313_s1 = smov 127   ;;  %s314_s21 = smov 97   ;;  %v315_v19 = vmov 0.0   ;;  %vm175_vm7 = vcmask 261120  }
   0xe   :  { %v55_v5 = vsub.f32 %v51_v3, %v53_v4  ;;  %v57_v15 = vand.u32 127, %v56_v14  ;;  %v77_v18 = vshrl.u32 %v56_v14, 7  ;;  %vm48_vm8 = vcmask 0   ;;  %s316_s23 = smov [#allocation8]   ;;  %s204_s27 = sshll.u32 %s353_s2, 4  ;;  %s205_s27 = int_to_ptr.hbm [resolvable:$true] %s204_s27 }
   0xf   :  { %116 = vrot.lane.b32.xlu0 %v338_v2, %s312_s0  ;;  %v168_v51 = vmul.f32 9.0, %v338_v2  ;;  %49 = vst.msk [vmem:[#allocation2] sm:$0x1] %vm48_vm8, %v315_v19  ;;  %s202_s24 = sshll.u32 %s316_s23, 4  ;;  %s203_s24 = int_to_ptr.vmem [resolvable:$true] %s202_s24 }
  0x10   :  { %v62_v17 = vand.u32 15, %v57_v15  ;;  %v78_v21 = vadd.s32 8, %v77_v18  ;;  %v83_v26 = vand.u32 15, %v77_v18  ;;  %vm152_vm5 = vcmp.lt.s32.totalorder %v77_v18, 1 }
  0x11   :  { %vm161_vm6 = vcmp.lt.s32.totalorder %v77_v18, 7  ;;  %v169_v48 = vmul.f32 9.0, %v55_v5 }
  0x12   :  { %vm70_vm1 = vcmp.gt.s32.totalorder %v62_v17, 0  ;;  %vm73_vm2 = vcmp.lt.s32.totalorder %v62_v17, 15  ;;  %v90_v29 = vand.u32 15, %v78_v21  ;;  %vm103_vm3 = vcmp.gt.s32.totalorder %v83_v26, 0 }
  0x13   :  { %v215_v20 = vsel %vm70_vm1, 1.0, %v315_v19  ;;  %v216_v23 = vsel %vm73_vm2, 1.0, %v315_v19  ;;  %v217_v36 = vsel %vm103_vm3, 1.0, %v315_v19 }
  0x14   :  { %vm110_vm4 = vcmp.lt.s32.totalorder %v90_v29, 15 }
  0x15   :  { %v218_v37 = vsel %vm110_vm4, 1.0, %v315_v19 }
  0x16   :  { %v172_v4 = vld [vmem:[#allocation2] sm:$0x1] }
  0x17   :  { %119 = vrot.lane.b32.xlu0 %v55_v5, %s312_s0 }
  0x81   :  { %v117_v6 = vpop.permute.xlu0 %116 }
  0x82   :  { %v118_v7 = vsel %vm115_vm0, %v117_v6, %v338_v2 }
  0x83   :  { %122 = vrot.lane.b32.xlu1 %v118_v7, %s312_s0 }
  0x89   :  { %v120_v8 = vpop.permute.xlu0 %119 }
  0x8a   :  { %v121_v9 = vsel %vm115_vm0, %v120_v8, %v55_v5 }
  0x8b   :  { %124 = vrot.lane.b32.xlu1 %v121_v9, %s312_s0 }
  0xf5   :  { %v123_v10 = vpop.permute.xlu1 %122 }
  0xf6   :  { %v126_v11 = vsel %vm115_vm0, %v123_v10, %v338_v2 }
  0xf7   :  { %140 = vrot.lane.b32.xlu0 %v126_v11, %s313_s1  ;;  %130 = vrot.lane.b32.xlu2 %v126_v11, %s314_s21 }
  0xfd   :  { %v125_v12 = vpop.permute.xlu1 %124 }
  0xfe   :  { %v127_v13 = vsel %vm115_vm0, %v125_v12, %v55_v5 }
  0xff   :  { %142 = vrot.lane.b32.xlu1 %v127_v13, %s313_s1  ;;  %132 = vrot.lane.b32.xlu2 %v127_v13, %s314_s21 }
 0x151   :  { %v131_v16 = vpop.permute.xlu2 %130 }
 0x152   :  { %v136_v25 = vmul.f32 %v215_v20, %v131_v16 }
 0x154   :  { %v138_v30 = vadd.f32 %v136_v25, %v338_v2 }
 0x159   :  { %v133_v22 = vpop.permute.xlu2 %132 }
 0x15a   :  { %v137_v27 = vmul.f32 %v215_v20, %v133_v22 }
 0x15c   :  { %v139_v32 = vadd.f32 %v137_v27, %v55_v5 }
 0x169   :  { %v141_v24 = vpop.permute.xlu0 %140 }
 0x16a   :  { %v146_v28 = vmul.f32 %v216_v23, %v141_v24 }
 0x16c   :  { %v148_v33 = vadd.f32 %v146_v28, %v138_v30 }
 0x16e   :  { %v150_v38 = vrot.slane %v148_v33, 7  ;;  %v159_v39 = vrot.slane %v148_v33, 1 }
 0x171   :  { %v143_v31 = vpop.permute.xlu1 %142 }
 0x172   :  { %v147_v34 = vmul.f32 %v216_v23, %v143_v31 }
 0x174   :  { %v149_v35 = vadd.f32 %v147_v34, %v139_v32 }
 0x176   :  { %v151_v40 = vrot.slane %v149_v35, 7  ;;  %v160_v41 = vrot.slane %v149_v35, 1 }
 0x178   :  { %v153_v42 = vsel %vm152_vm5, %v150_v38, %v151_v40  ;;  %v154_v43 = vsel %vm152_vm5, %v151_v40, %v150_v38  ;;  %v163_v44 = vsel %vm161_vm6, %v160_v41, %v159_v39  ;;  %v162_v52 = vsel %vm161_vm6, %v159_v39, %v160_v41 }
 0x179   :  { %v158_v45 = vadd.f32 %v153_v42, %v149_v35  ;;  %v155_v46 = vmul.f32 %v217_v36, %v154_v43  ;;  %v165_v47 = vmul.f32 %v218_v37, %v163_v44 }
 0x17b   :  { %v157_v49 = vadd.f32 %v155_v46, %v148_v33  ;;  %v167_v50 = vadd.f32 %v165_v47, %v158_v45 }
 0x17d   :  { %v166_v53 = vadd.f32 %v162_v52, %v157_v49  ;;  %v171_v54 = vsub.f32 %v169_v48, %v167_v50 }
 0x17f   :  { %v170_v55 = vsub.f32 %v168_v51, %v166_v53  ;;  %v174_v56 = vmul.f32 %v171_v54, %v171_v54 }
 0x181   :  { %v173_v57 = vmul.f32 %v170_v55, %v170_v55  ;;  %v177_v59 = vsel %vm175_vm7, %v174_v56, 0.0 }
 0x183   :  { %v176_v58 = vsel %vm175_vm7, %v173_v57, 0.0 }
 0x184   :  { %v178_v60 = vadd.f32 %v177_v59, %v176_v58 }
 0x186   :  { %179 = vadd.xlane.f32.xlu2 %v178_v60 }
 0x1f9   :  { %v180_v61 = vpop.xlane.xlu2 %179 }
 0x1fa   :  { %v181_v62 = vrot.slane %v180_v61, 4 }
 0x1fc   :  { %v182_v63 = vadd.f32 %v181_v62, %v180_v61 }
 0x1fe   :  { %v183_v0 = vrot.slane %v182_v63, 2 }
 0x200   :  { %v184_v1 = vadd.f32 %v183_v0, %v182_v63 }
 0x202   :  { %v185_v2 = vrot.slane %v184_v1, 1 }
 0x204   :  { %v186_v3 = vadd.f32 %v185_v2, %v184_v1 }
 0x206   :  { %219 = vpush %v186_v3 }
 0x237   :  { %s220_s22 = spop %219 }
 0x238   :  { %v188_v5 = vstv %s220_s22 }
 0x239   :  { %v189_v6 = vadd.f32 %v188_v5, %v172_v4 }
 0x23b   :  { %191 = vst.msk [vmem:[#allocation2] sm:$0x1] %vm48_vm8, %v189_v6 }
 0x242   :  { %v195_v7 = vld [vmem:[#allocation2] sm:$0x1] }
 0x243   :  { %196 = vst.msk [vmem:[#allocation8] sm:$0x1] %vm48_vm8, %v195_v7 }
 0x244   :  { %207 = dma.vmem_to_hbm [thread:$0]  %s203_s24, 16, %s205_s27, [#allocation5]  }
 0x245   :  { %306 = dma.done.wait [#allocation5], 16  }
 0x246   :  { %307 = vsyncadd [#allocation5], 4294967280 }
 0x247   :  { %212 = vsyncpa [#allocation4], 1 }
 0x248   :  { %213 = vsyncpa [#allocation7], 1 }
 0x249   :  { %214 = vsyncpa [#allocation5], 1 }

</bundles_post_ra>
